<compile_context>
chip_gen: v7x
topology: tpu7x:2x2x1
jax: 0.10.0
libtpu: 0.0.40
codegen_flags: <defaults>
</compile_context>

<pallas_src>
import jax
import jax.numpy as jnp
from jax.experimental import pallas as pl
from jax.experimental.pallas import tpu as pltpu


def _normalize_kernel(x_ref, p_ref, o_ref):
    # Pure VPU elementwise pass on one VMEM tile.  p_ref holds per-row
    # (scale, shift) in f32; each (br, 1) column broadcasts across the lane dim.
    x = x_ref[...].astype(jnp.float32)
    scale = p_ref[:, 0:1]
    shift = p_ref[:, 1:2]
    o_ref[...] = (x * scale + shift).astype(o_ref.dtype)


def _default_block_target():
    """Per-generation block-size target (bytes)."""
    try:
        kind = jax.devices()[0].device_kind.lower()
    except Exception:  # pragma: no cover - defensive; default is fine everywhere
        kind = ""
    # v5e: lower HBM BW and 16 MiB scoped-VMEM default -> ~2 MiB blocks suffice.
    if "v5 lite" in kind or "v5lite" in kind or "v5e" in kind:
        return 2 << 20
    # v6e / v7x: bigger blocks halve the step count / fixed overhead fraction.
    return 4 << 20


def _choose_blocks(rows, cols, itemsize, target_bytes, *, min_blocks=8):
    """Pick (BR, BC) so one block is ~target_bytes and TPU layout rules hold.

    BC is the full width or a lane-dense multiple of 128; BR is the full height
    or a multiple of the dtype's native sublane packing (f32:8, bf16:16, u8:32).
    Large slabs are split into at least `min_blocks` blocks so the pipeline has
    work to overlap and v7x's two TensorCores both get blocks.
    Partial boundary blocks are handled by the cdiv grid (masked stores).
    """
    sub = max(8, 32 // itemsize)  # native sublane packing for this dtype

    # Lane (column) block: full width unless even a `sub`-row strip exceeds target.
    max_lanes = max(128, (target_bytes // (sub * itemsize)) // 128 * 128)
    bc = cols if cols <= max_lanes else max_lanes

    # Sublane (row) block.
    if rows * bc * itemsize <= target_bytes:
        br = rows
    else:
        br = max(sub, (target_bytes // (bc * itemsize)) // sub * sub)
        br = min(br, rows)

    # Degeneracy guard: big slab but only a handful of blocks -> no DMA/compute
    # overlap and (on v7x) one idle TensorCore.  Split rows first, then columns.
    def nblocks(br_, bc_):
        return pl.cdiv(rows, br_) * pl.cdiv(cols, bc_)

    if rows * cols * itemsize >= (2 << 20):
        while br > sub and nblocks(br, bc) < min_blocks:
            br = max(sub, (br // 2) // sub * sub)
        while bc > 128 and nblocks(br, bc) < min_blocks:
            bc = max(128, (bc // 2) // 128 * 128)

    return br, bc


def functional_module_forward(x, mean, std, *, force_pallas=False,
                              block_target_bytes=None):
    """Pallas equivalent of FunctionalModule(lambda x: (x - mean[c]) / std[c]).

    x:    (N, C, H, W)  float32 / bfloat16 / ...
    mean: (C,) float32
    std:  (C,) float32
    """
    n, c, h, w = x.shape
    rows = n * c
    cols = h * w
    itemsize = jnp.dtype(x.dtype).itemsize
    if block_target_bytes is None:
        block_target_bytes = _default_block_target()

    # Fold the division out of the kernel: y = x * scale + shift (per row),
    # packed as a single (rows, 2) f32 param array -> one small param DMA.
    inv_std = 1.0 / std.astype(jnp.float32)
    scale = jnp.tile(inv_std, (n,)).reshape(rows, 1)
    shift = jnp.tile((-mean.astype(jnp.float32)) * inv_std, (n,)).reshape(rows, 1)
    params = jnp.concatenate([scale, shift], axis=1)  # (rows, 2)

    # Tiny inputs: pallas_call launch / per-step overhead dwarfs the HBM traffic;
    # let XLA fuse the elementwise op (kernel is reserved for real video slabs).
    if not force_pallas and x.size * itemsize < (1 << 20):
        y = x.reshape(rows, cols).astype(jnp.float32) * scale + shift
        return y.astype(x.dtype).reshape(n, c, h, w)

    x2d = x.reshape(rows, cols)
    br, bc = _choose_blocks(rows, cols, itemsize, block_target_bytes)
    grid = (pl.cdiv(rows, br), pl.cdiv(cols, bc))  # columns innermost -> param reuse

    # VMEM budget: double-buffered input + output blocks + padded params + headroom.
    blk_bytes = br * bc * itemsize
    vmem_limit = int(min(max(4 * blk_bytes + (4 << 20), 16 << 20), 48 << 20))

    out2d = pl.pallas_call(
        _normalize_kernel,
        out_shape=jax.ShapeDtypeStruct((rows, cols), x.dtype),
        grid=grid,
        in_specs=[
            pl.BlockSpec((br, bc), lambda i, j: (i, j)),
            pl.BlockSpec((br, 2), lambda i, j: (i, 0)),   # refetched only when i changes
        ],
        out_specs=pl.BlockSpec((br, bc), lambda i, j: (i, j)),
        compiler_params=pltpu.CompilerParams(
            # Independent elementwise blocks -> shard across both TCs on v7x.
            dimension_semantics=("parallel", "parallel"),
            vmem_limit_bytes=vmem_limit,
        ),
    )(x2d, params)

    return out2d.reshape(n, c, h, w)


if __name__ == "__main__":
    key = jax.random.PRNGKey(0)
    kx, km, ks = jax.random.split(key, 3)

    N, C, H, W = 2, 4, 16, 16
    x = jax.random.normal(kx, (N, C, H, W), dtype=jnp.float32)
    # Deterministic "parameters" of the wrapped functional.
    mean = jax.random.normal(km, (C,), dtype=jnp.float32) * 0.1
    std = jax.random.uniform(ks, (C,), dtype=jnp.float32, minval=0.5, maxval=1.5)

    # force_pallas=True so the test exercises the Pallas kernel even at this
    # tiny shape (production dispatch would route small inputs to plain XLA).
    out = functional_module_forward(x, mean, std, force_pallas=True)
    out = jax.block_until_ready(out)

    # Reference check against plain JAX (same semantics as the PyTorch module
    # wrapping this functional).
    ref = (x - mean.reshape(1, C, 1, 1)) / std.reshape(1, C, 1, 1)
    assert out.shape == (N, C, H, W)
    assert out.dtype == jnp.float32
    assert jnp.allclose(out, ref, atol=1e-5, rtol=1e-5)

    print("KERNEL_OK")
</pallas_src>

<mosaic_0001>
module attributes {stable_mosaic.version = 11 : i64} {
  func.func @_normalize_kernel(%arg0: i32, %arg1: i32, %arg2: memref<8x256xf32, #tpu.memory_space<vmem>>, %arg3: memref<8x2xf32, #tpu.memory_space<vmem>>, %arg4: memref<8x256xf32, #tpu.memory_space<vmem>>) attributes {dimension_semantics = [#tpu.dimension_semantics<parallel>, #tpu.dimension_semantics<parallel>], iteration_bounds = array<i64: 1, 1>, scalar_prefetch = 0 : i64, scratch_operands = 0 : i64, tpu.core_type = #tpu.core_type<tc>, window_params = [{transform_indices = @transform_0, window_bounds = array<i64: 8, 256>}, {transform_indices = @transform_1, window_bounds = array<i64: 8, 2>}, {transform_indices = @transform_2, window_bounds = array<i64: 8, 256>}]} {
    %c0 = arith.constant 0 : index
    %c0_0 = arith.constant 0 : index
    %0 = vector.load %arg2[%c0, %c0_0] : memref<8x256xf32, #tpu.memory_space<vmem>>, vector<8x256xf32>
    %c0_1 = arith.constant 0 : index
    %c0_2 = arith.constant 0 : index
    %1 = vector.load %arg3[%c0_1, %c0_2] : memref<8x2xf32, #tpu.memory_space<vmem>>, vector<8x1xf32>
    %c0_3 = arith.constant 0 : index
    %c1 = arith.constant 1 : index
    %2 = vector.load %arg3[%c0_3, %c1] : memref<8x2xf32, #tpu.memory_space<vmem>>, vector<8x1xf32>
    %3 = vector.broadcast %1 : vector<8x1xf32> to vector<8x256xf32>
    %4 = arith.mulf %0, %3 : vector<8x256xf32>
    %5 = vector.broadcast %2 : vector<8x1xf32> to vector<8x256xf32>
    %6 = arith.addf %4, %5 : vector<8x256xf32>
    %c0_4 = arith.constant 0 : index
    %c0_5 = arith.constant 0 : index
    %7 = vector.load %arg4[%c0_4, %c0_5] : memref<8x256xf32, #tpu.memory_space<vmem>>, vector<8x256xf32>
    tpu.vector_store %arg4[%c0_4, %c0_5], %6 {strides = array<i32>} : memref<8x256xf32, #tpu.memory_space<vmem>>, vector<8x256xf32>,
    return
  }
  func.func @transform_0(%arg0: i32, %arg1: i32) -> (i32, i32) {
    %c0_i32 = arith.constant 0 : i32
    return %arg0, %arg1 : i32, i32
  }
  func.func @transform_1(%arg0: i32, %arg1: i32) -> (i32, i32) {
    %c0_i32 = arith.constant 0 : i32
    %c0_i32_0 = arith.constant 0 : i32
    return %arg0, %c0_i32 : i32, i32
  }
  func.func @transform_2(%arg0: i32, %arg1: i32) -> (i32, i32) {
    %c0_i32 = arith.constant 0 : i32
    return %arg0, %arg1 : i32, i32
  }
}

</mosaic_0001>

<bundles_post_ra>
// kernel: tpu_custom_call.1
= control target key start
LH: loop header
LB: loop body
LE: loop exit
PB: predicated region body
PF: predicated region fallthrough
CT: control target
= control target key end

     0   :  { %7 = vsyncpa [#allocation3], 0  ;;  %s157_s0 = inlined_call_operand.hbm [shape: f32[8,256], index: 0, kind: input, shape index: {}]   ;;  %s158_s1 = inlined_call_operand.vmem [shape: f32[8,2], index: 1, kind: input, shape index: {}]   ;;  %s159_s2 = inlined_call_operand.hbm [shape: f32[8,256], index: 2, kind: output, shape index: {}]  }
   0x1   :  { %8 = vsyncpa [#allocation4], 0  ;;  %s111_s9 = smov [#allocation2]   ;;  %s63_s13 = scalar_lea.hbm %s157_s0, 256 }
   0x2   :  { %s15_s10 = sshll.u32 %s111_s9, 4  ;;  %p64_p0 = scmp.ne.s32.totalorder %s157_s0, %s63_s13  ;;  %s16_s10 = int_to_ptr.vmem [resolvable:$true] %s15_s10 }
   0x3   :  { %p67_p1 = scmp.lt.u32.totalorder %s63_s13, %s157_s0 }
   0x5   :  { %p69_p2 = pnand %p67_p1, %p64_p0 }
   0x7   :  { %72 = shalt.err (!%p69_p2)
}
   0x8   :  { %s73_s18 = scalar_lea.vmem %s16_s10, 256  ;;  %p78_p4 = scmp.lt.s32.totalorder %s16_s10, %s16_s10 }
   0x9   :  { %p74_p3 = scmp.ne.s32.totalorder %s16_s10, %s73_s18  ;;  %p79_p5 = scmp.lt.s32.totalorder %s73_s18, %s73_s18 }
   0xb   :  { %p80_p6 = por %p79_p5, %p78_p4 }
   0xd   :  { %p81_p7 = pnand %p80_p6, %p74_p3 }
   0xf   :  { %84 = shalt.err (!%p81_p7)
}
  0x10   :  { %18 = dma.hbm_to_vmem [thread:$0]  %s157_s0, 256, %s16_s10, [#allocation3]  }
  0x11   :  { %107 = dma.done.wait [#allocation3], 256  }
  0x12   :  { %108 = vsyncadd [#allocation3], 4294967040  ;;  %v112_v0 = vmov 0   ;;  %v26_v1 = vld [vmem:[%s158_s1] sm:$0xff]  ;;  %v113_v2 = vmov 1   ;;  %v25_v5 = vld [vmem:[#allocation2 + $0x8] sm:$0xff] }
  0x13   :  { %61 = vset.pattern.permute.xlu0 %v112_v0  ;;  %v24_v4 = vld [vmem:[#allocation2] sm:$0xff]  ;;  %s114_s23 = smov [#allocation5]  }
  0x14   :  { %29 = vperm.xlu0 %61, %v26_v1   ;;  %s48_s24 = sshll.u32 %s114_s23, 4  ;;  %s49_s24 = int_to_ptr.vmem [resolvable:$true] %s48_s24 }
  0x15   :  { %s85_s0 = scalar_lea.vmem %s49_s24, 256  ;;  %p90_p9 = scmp.lt.s32.totalorder %s49_s24, %s49_s24 }
  0x16   :  { %p86_p8 = scmp.ne.s32.totalorder %s49_s24, %s85_s0  ;;  %p91_p10 = scmp.lt.s32.totalorder %s85_s0, %s85_s0 }
  0x18   :  { %62 = vset.pattern.permute.xlu0 %v113_v2  ;;  %p92_p11 = por %p91_p10, %p90_p9 }
  0x19   :  { %35 = vperm.xlu0 %62, %v26_v1  }
  0x1a   :  { %p93_p12 = pnand %p92_p11, %p86_p8 }
  0x93   :  { %v30_v3 = vpop.permute.xlu0 %29 }
  0x94   :  { %v32_v6 = vmul.f32 %v30_v3, %v24_v4  ;;  %v33_v7 = vmul.f32 %v30_v3, %v25_v5 }
  0x98   :  { %v36_v8 = vpop.permute.xlu0 %35 }
  0x99   :  { %v38_v9 = vadd.f32 %v36_v8, %v32_v6  ;;  %v39_v10 = vadd.f32 %v36_v8, %v33_v7 }
  0x9b   :  { %40 = vst [vmem:[#allocation5] sm:$0xff] %v38_v9  ;;  %41 = vst [vmem:[#allocation5 + $0x8] sm:$0xff] %v39_v10 }
  0x9c   :  { %96 = shalt.err (!%p93_p12)
}
  0x9d   :  { %s97_s26 = scalar_lea.hbm %s159_s2, 256 }
  0x9e   :  { %p98_p13 = scmp.ne.s32.totalorder %s159_s2, %s97_s26  ;;  %p101_p0 = scmp.lt.u32.totalorder %s97_s26, %s159_s2 }
  0xa0   :  { %p103_p1 = pnand %p101_p0, %p98_p13 }
  0xa2   :  { %106 = shalt.err (!%p103_p1)
}
  0xa3   :  { %51 = dma.vmem_to_hbm [thread:$0]  %s49_s24, 256, %s159_s2, [#allocation4]  }
  0xa4   :  { %109 = dma.done.wait [#allocation4], 256  }
  0xa5   :  { %110 = vsyncadd [#allocation4], 4294967040 }
  0xa6   :  { %55 = vsyncpa [#allocation3], 1 }
  0xa7   :  { %56 = vsyncpa [#allocation4], 1 }

</bundles_post_ra>
